<compile_context>
chip_gen: v6e
topology: v6e:2x2x1
jax: 0.10.0
libtpu: 0.0.40
codegen_flags: <defaults>
</compile_context>

<pallas_src>
import functools

import jax
import jax.numpy as jnp
from jax.experimental import pallas as pl
from jax.experimental.pallas import tpu as pltpu


def _sa_layer_kernel(x_ref, wq_ref, wv_ref, bv_ref, wt_ref, bt_ref, beta_ref,
                     out_ref, att_sc, u_sc, *, n_valid, n_pad, block_b):
    N = n_valid
    Np = n_pad

    x_f32 = x_ref[...]                                    # (C, Bb*Np) f32
    x_bf = x_f32.astype(jnp.bfloat16)                     # MXU operand

    # Fused q/k and v projections over the whole batch block (MXU, bf16 in, f32 acc).
    qk_all = jnp.dot(wq_ref[...], x_bf, preferred_element_type=jnp.float32)
    xv_all = jnp.dot(wv_ref[...], x_bf,
                     preferred_element_type=jnp.float32) + bv_ref[...]

    beta = beta_ref[...]                                  # (1, Np) f32, zero-padded
    padded = Np != N
    if padded:
        valid_k = jax.lax.broadcasted_iota(jnp.int32, (1, Np), 1) < N   # key/lane mask
        valid_q = jax.lax.broadcasted_iota(jnp.int32, (Np, 1), 0) < N   # query/row mask
    neg_big = jnp.float32(-1e30)

    for bb in range(block_b):                             # static unroll; Bb is small
        col = slice(bb * Np, (bb + 1) * Np)
        qk = qk_all[:, col]                               # (C4p, Np) f32
        xv = xv_all[:, col]                               # (C, Np)  f32

        # x_w = softmax over channels of max-over-(valid)-points(x_v): (C, 1)
        xv_m = jnp.where(valid_k, xv, neg_big) if padded else xv
        xw = jnp.max(xv_m, axis=1, keepdims=True)
        xw = jnp.exp(xw - jnp.max(xw, axis=0, keepdims=True))
        xw = xw * pl.reciprocal(jnp.sum(xw, axis=0, keepdims=True), approx=True)

        # energy = x_q @ x_k = qk^T qk (contract channels) -> (Np, Np), bf16 on MXU.
        qk_bf = qk.astype(jnp.bfloat16)
        energy = jax.lax.dot_general(
            qk_bf, qk_bf, dimension_numbers=(((0,), (0,)), ((), ())),
            preferred_element_type=jnp.float32)

        # Row softmax + column (dim=1) renormalization, all in f32; the final
        # attention lands once in the shared (Np, Np) VMEM scratch.
        if padded:
            energy = jnp.where(valid_k, energy, neg_big)   # kill padded key columns
        p = jnp.exp(energy - jnp.max(energy, axis=-1, keepdims=True))
        p = p * pl.reciprocal(jnp.sum(p, axis=-1, keepdims=True), approx=True)
        if padded:
            # Padded query rows must not pollute the column renormalization.
            p = jnp.where(valid_q, p, 0.0)
        att_sc[...] = p * pl.reciprocal(
            jnp.float32(1e-9) + jnp.sum(p, axis=0, keepdims=True), approx=True)

        # x_r = x_v @ attention (MXU, bf16 in, f32 acc), then affine.
        x_r = jnp.dot(xv.astype(jnp.bfloat16), att_sc[...].astype(jnp.bfloat16),
                      preferred_element_type=jnp.float32)
        x_r = x_r * xw + beta                             # padded columns stay exactly 0

        # t = mean over the true N points; u = x - t goes into the slab for trans_conv.
        t = jnp.sum(x_r, axis=1, keepdims=True) * jnp.float32(1.0 / N)
        u_sc[:, col] = (x_f32[:, col] - t).astype(jnp.bfloat16)

    # trans_conv (BN folded into wt/bt at trace time) + ReLU + residual,
    # again fused across the whole batch block.
    tc = jnp.dot(wt_ref[...], u_sc[...],
                 preferred_element_type=jnp.float32) + bt_ref[...]
    out_ref[...] = x_f32 + jnp.maximum(tc, 0.0)


def _round_up(v, m):
    return (v + m - 1) // m * m


def _pick_batch_block(B, C, Np):
    """Largest divisor of B that keeps >= 2 grid steps (both v7x TCs busy) and
    keeps the per-step slabs comfortably inside VMEM."""
    budget = 8 * 1024 * 1024
    per_b = C * Np * 22                     # x/out/u/qk/xv slabs per batch element
    cap = max(1, budget // max(per_b, 1))
    best = 1
    for bb in range(1, B + 1):
        if B % bb == 0 and bb <= cap and (B // bb >= 2 or B == 1):
            best = bb
    return best


@jax.jit
def sa_layer_pallas(x, params):
    B, C, N = x.shape
    C4 = params["wq"].shape[0]
    C4p = _round_up(C4, 8)                  # pad q/k channels to a full sublane group
    Np = _round_up(N, 128)                  # pad points for lane-dense stores
    Bb = _pick_batch_block(B, C, Np)
    G = B // Bb
    W = Bb * Np
    f32 = jnp.float32

    # ---- trace-time parameter prep (folded into the XLA graph, free) ----
    wt_f = (params["bn_scale"] * params["wt"]).astype(jnp.bfloat16)   # BN folded
    bt_f = (params["bn_scale"] * params["bt"] + params["bn_shift"]).astype(f32)
    wq_p = jnp.zeros((C4p, C), f32).at[:C4].set(params["wq"]).astype(jnp.bfloat16)
    wv_b = params["wv"].astype(jnp.bfloat16)
    bv = params["bv"].astype(f32)
    beta_p = jnp.zeros((1, Np), f32).at[:, :N].set(params["beta"])

    # ---- lane-dense input slab: (B, C, N) -> (C, B*Np), f32 (residual precision) ----
    x_p = jnp.zeros((C, B, Np), f32).at[:, :, :N].set(jnp.transpose(x, (1, 0, 2)))
    x2 = x_p.reshape(C, B * Np)

    kernel = functools.partial(_sa_layer_kernel, n_valid=N, n_pad=Np, block_b=Bb)

    vmem_est = (2 * C * W * (4 + 4)                  # x + out (f32), double buffered
                + 2 * 2 * (C4p * C + 2 * C * C)      # bf16 weights, double buffered
                + Np * Np * 4 + C * W * 2            # attention + u scratches
                + (C4p + 3 * C) * W * 4              # qk_all / xv_all / x_bf / tc temps
                + 4 * Np * Np * 4)                   # softmax temporaries
    vmem_limit = int(min(max(2 * vmem_est, 32 * 1024 * 1024), 60 * 1024 * 1024))

    def const2(shape):
        return pl.BlockSpec(shape, lambda i: (0, 0))

    out2 = pl.pallas_call(
        kernel,
        out_shape=jax.ShapeDtypeStruct((C, B * Np), f32),
        grid=(G,),
        in_specs=[
            pl.BlockSpec((C, W), lambda i: (0, i)),   # x slab (Bb batches per step)
            const2((C4p, C)),                         # shared q/k weight (padded rows)
            const2((C, C)),                           # v weight
            const2((C, 1)),                           # v bias
            const2((C, C)),                           # trans_conv weight (BN folded)
            const2((C, 1)),                           # trans_conv bias (BN folded)
            const2((1, Np)),                          # affine_beta (zero padded)
        ],
        out_specs=pl.BlockSpec((C, W), lambda i: (0, i)),
        scratch_shapes=[
            pltpu.VMEM((Np, Np), f32),                # shared attention buffer
            pltpu.VMEM((C, W), jnp.bfloat16),         # u = x - t slab for trans_conv
        ],
        compiler_params=pltpu.CompilerParams(
            dimension_semantics=("parallel",),
            vmem_limit_bytes=vmem_limit,
        ),
    )(x2, wq_p, wv_b, bv, wt_f, bt_f, beta_p)

    return out2.reshape(C, B, Np).transpose(1, 0, 2)[:, :, :N]


def sa_layer_reference(x, params, mirror_bf16=False):
    """Plain-JAX reference of SA_Layerzj.forward (eval-mode BatchNorm).

    mirror_bf16=True rounds matmul operands to bf16 exactly like the kernel
    (f32 accumulation, f32 residual path), isolating kernel bugs from
    expected bf16 drift."""
    f32 = jnp.float32
    bf = jnp.bfloat16 if mirror_bf16 else f32
    x32 = x.astype(f32)
    xb = x32.astype(bf)
    wq = params["wq"].astype(bf)
    wv = params["wv"].astype(bf)
    wt_f = (params["bn_scale"] * params["wt"]).astype(bf)
    bt_f = (params["bn_scale"] * params["bt"] + params["bn_shift"]).astype(f32)
    bv, beta = params["bv"], params["beta"]

    qk = jnp.einsum("oc,bcn->bon", wq, xb, preferred_element_type=f32)
    xv = jnp.einsum("oc,bcn->bon", wv, xb, preferred_element_type=f32) + bv[None]
    xw = jax.nn.softmax(jnp.max(xv, axis=2), axis=-1)[..., None]        # (B, C, 1)
    qkb = qk.astype(bf)
    energy = jnp.einsum("bcn,bcm->bnm", qkb, qkb, preferred_element_type=f32)
    att = jax.nn.softmax(energy, axis=-1)
    att = att / (1e-9 + jnp.sum(att, axis=1, keepdims=True))
    x_r = jnp.einsum("bcn,bnm->bcm", xv.astype(bf), att.astype(bf),
                     preferred_element_type=f32)
    x_r = x_r * xw + beta[None]
    t = jnp.mean(x_r, axis=2, keepdims=True)
    u = (x32 - t).astype(bf)
    tc = jnp.einsum("oc,bcn->bon", wt_f, u, preferred_element_type=f32) + bt_f[None]
    return x32 + jnp.maximum(tc, 0.0)


def make_params(key, channels, points):
    C, N = channels, points
    C4 = C // 4
    ks = jax.random.split(key, 9)
    wq = 0.2 * jax.random.normal(ks[0], (C4, C), jnp.float32)   # shared q/k weight
    wv = 0.2 * jax.random.normal(ks[1], (C, C), jnp.float32)
    bv = 0.1 * jax.random.normal(ks[2], (C, 1), jnp.float32)
    wt = 0.2 * jax.random.normal(ks[3], (C, C), jnp.float32)
    bt = 0.1 * jax.random.normal(ks[4], (C, 1), jnp.float32)
    # Eval-mode BatchNorm1d (module init is gamma=1, beta=0, mean=0, var=1;
    # randomized slightly here so the BN-folding path is actually exercised).
    eps = 1e-5
    gamma = 1.0 + 0.1 * jax.random.normal(ks[5], (C, 1), jnp.float32)
    bbeta = 0.1 * jax.random.normal(ks[6], (C, 1), jnp.float32)
    rmean = 0.1 * jax.random.normal(ks[7], (C, 1), jnp.float32)
    rvar = 1.0 + 0.1 * jnp.abs(jax.random.normal(ks[8], (C, 1), jnp.float32))
    bn_scale = gamma / jnp.sqrt(rvar + eps)
    bn_shift = bbeta - rmean * bn_scale
    # affine_beta is zeros at module init; small random here to test the path.
    beta = 0.1 * jax.random.normal(jax.random.fold_in(key, 7), (1, N), jnp.float32)
    return dict(wq=wq, wv=wv, bv=bv, wt=wt, bt=bt,
                bn_scale=bn_scale, bn_shift=bn_shift, beta=beta)


if __name__ == "__main__":
    B, C, N = 2, 16, 64          # batch, channels, points  (C // 4 = 4)
    key = jax.random.PRNGKey(0)
    kx, kp = jax.random.split(key)
    x = jax.random.normal(kx, (B, C, N), jnp.float32)
    params = make_params(kp, C, N)

    out = jax.block_until_ready(sa_layer_pallas(x, params))
    assert out.shape == (B, C, N)

    # Tight check vs a reference mirroring the kernel's bf16-matmul policy.
    ref_bf = sa_layer_reference(x, params, mirror_bf16=True)
    assert jnp.allclose(out, ref_bf, atol=2e-2, rtol=2e-2), (
        f"max err vs bf16-mirrored ref: {jnp.max(jnp.abs(out - ref_bf))}")
    # Loose sanity check vs the exact f32 forward (bounds total bf16 drift).
    ref_f32 = sa_layer_reference(x, params, mirror_bf16=False)
    assert jnp.allclose(out, ref_f32, atol=2e-1, rtol=1e-1), (
        f"max err vs f32 ref: {jnp.max(jnp.abs(out - ref_f32))}")
    print("KERNEL_OK")
</pallas_src>

<mosaic_0001>
module attributes {stable_mosaic.version = 11 : i64} {
  func.func @_sa_layer_kernel(%arg0: i32, %arg1: memref<16x128xf32, #tpu.memory_space<vmem>>, %arg2: memref<8x16xbf16, #tpu.memory_space<vmem>>, %arg3: memref<16x16xbf16, #tpu.memory_space<vmem>>, %arg4: memref<16x1xf32, #tpu.memory_space<vmem>>, %arg5: memref<16x16xbf16, #tpu.memory_space<vmem>>, %arg6: memref<16x1xf32, #tpu.memory_space<vmem>>, %arg7: memref<1x128xf32, #tpu.memory_space<vmem>>, %arg8: memref<16x128xf32, #tpu.memory_space<vmem>>, %arg9: memref<128x128xf32, #tpu.memory_space<vmem>>, %arg10: memref<16x128xbf16, #tpu.memory_space<vmem>>) attributes {dimension_semantics = [#tpu.dimension_semantics<parallel>], iteration_bounds = array<i64: 2>, scalar_prefetch = 0 : i64, scratch_operands = 2 : i64, tpu.core_type = #tpu.core_type<tc>, window_params = [{transform_indices = @transform_0, window_bounds = array<i64: 16, 128>}, {pipeline_mode = #tpu.pipeline_mode<synchronous>, transform_indices = @transform_1, window_bounds = array<i64: 8, 16>}, {pipeline_mode = #tpu.pipeline_mode<synchronous>, transform_indices = @transform_2, window_bounds = array<i64: 16, 16>}, {pipeline_mode = #tpu.pipeline_mode<synchronous>, transform_indices = @transform_3, window_bounds = array<i64: 16, 1>}, {pipeline_mode = #tpu.pipeline_mode<synchronous>, transform_indices = @transform_4, window_bounds = array<i64: 16, 16>}, {pipeline_mode = #tpu.pipeline_mode<synchronous>, transform_indices = @transform_5, window_bounds = array<i64: 16, 1>}, {pipeline_mode = #tpu.pipeline_mode<synchronous>, transform_indices = @transform_6, window_bounds = array<i64: 1, 128>}, {transform_indices = @transform_7, window_bounds = array<i64: 16, 128>}]} {
    %c0 = arith.constant 0 : index
    %c0_0 = arith.constant 0 : index
    %0 = vector.load %arg1[%c0, %c0_0] : memref<16x128xf32, #tpu.memory_space<vmem>>, vector<16x128xf32>
    %1 = arith.truncf %0 : vector<16x128xf32> to vector<16x128xbf16>
    %c0_1 = arith.constant 0 : index
    %c0_2 = arith.constant 0 : index
    %2 = vector.load %arg2[%c0_1, %c0_2] : memref<8x16xbf16, #tpu.memory_space<vmem>>, vector<8x16xbf16>
    %cst = arith.constant dense<0.000000e+00> : vector<8x128xf32>
    %3 = tpu.matmul %2, %1, %cst {dimension_numbers = #tpu.dot_dimension_numbers<[1], [0], [0], [1], [0, 0, 1, 1], [], []>} : vector<8x16xbf16>, vector<16x128xbf16>, vector<8x128xf32> -> vector<8x128xf32>
    %c0_3 = arith.constant 0 : index
    %c0_4 = arith.constant 0 : index
    %4 = vector.load %arg3[%c0_3, %c0_4] : memref<16x16xbf16, #tpu.memory_space<vmem>>, vector<16x16xbf16>
    %cst_5 = arith.constant dense<0.000000e+00> : vector<16x128xf32>
    %5 = tpu.matmul %4, %1, %cst_5 {dimension_numbers = #tpu.dot_dimension_numbers<[1], [0], [0], [1], [0, 0, 1, 1], [], []>} : vector<16x16xbf16>, vector<16x128xbf16>, vector<16x128xf32> -> vector<16x128xf32>
    %c0_6 = arith.constant 0 : index
    %c0_7 = arith.constant 0 : index
    %6 = vector.load %arg4[%c0_6, %c0_7] : memref<16x1xf32, #tpu.memory_space<vmem>>, vector<16x1xf32>
    %7 = vector.broadcast %6 : vector<16x1xf32> to vector<16x128xf32>
    %8 = arith.addf %5, %7 : vector<16x128xf32>
    %c0_8 = arith.constant 0 : index
    %c0_9 = arith.constant 0 : index
    %9 = vector.load %arg7[%c0_8, %c0_9] : memref<1x128xf32, #tpu.memory_space<vmem>>, vector<1x128xf32>
    %10 = tpu.iota {dimensions = array<i32: 1>} : vector<1x128xi32>
    %c64_i32 = arith.constant 64 : i32
    %11 = vector.broadcast %c64_i32 : i32 to vector<1x128xi32>
    %12 = arith.cmpi slt, %10, %11 : vector<1x128xi32>
    %13 = tpu.iota {dimensions = array<i32: 0>} : vector<128x1xi32>
    %c64_i32_10 = arith.constant 64 : i32
    %14 = vector.broadcast %c64_i32_10 : i32 to vector<128x1xi32>
    %15 = arith.cmpi slt, %13, %14 : vector<128x1xi32>
    %cst_11 = arith.constant -1.000000e+30 : f32
    %16 = vector.shape_cast %12 : vector<1x128xi1> to vector<1x128xi1>
    %17 = vector.broadcast %16 : vector<1x128xi1> to vector<16x128xi1>
    %18 = vector.broadcast %cst_11 : f32 to vector<16x128xf32>
    %19 = arith.select %17, %8, %18 : vector<16x128xi1>, vector<16x128xf32>
    %cst_12 = arith.constant dense<0xFF800000> : vector<16xf32>
    %20 = vector.multi_reduction <maximumf>, %19, %cst_12 [1] : vector<16x128xf32> to vector<16xf32>
    %21 = vector.shape_cast %20 : vector<16xf32> to vector<16x1xf32>
    %cst_13 = arith.constant dense<0xFF800000> : vector<1xf32>
    %22 = vector.multi_reduction <maximumf>, %21, %cst_13 [0] : vector<16x1xf32> to vector<1xf32>
    %23 = vector.shape_cast %22 : vector<1xf32> to vector<1x1xf32>
    %24 = vector.broadcast %23 : vector<1x1xf32> to vector<16x1xf32>
    %25 = arith.subf %21, %24 : vector<16x1xf32>
    %26 = math.exp %25 : vector<16x1xf32>
    %cst_14 = arith.constant dense<0.000000e+00> : vector<1xf32>
    %27 = vector.multi_reduction <add>, %26, %cst_14 [0] : vector<16x1xf32> to vector<1xf32>
    %28 = vector.shape_cast %27 : vector<1xf32> to vector<1x1xf32>
    %29 = tpu.reciprocal %28 {approx = true} : vector<1x1xf32> -> vector<1x1xf32>
    %30 = vector.broadcast %29 : vector<1x1xf32> to vector<16x1xf32>
    %31 = arith.mulf %26, %30 : vector<16x1xf32>
    %32 = arith.truncf %3 : vector<8x128xf32> to vector<8x128xbf16>
    %cst_15 = arith.constant dense<0.000000e+00> : vector<128x128xf32>
    %33 = tpu.matmul %32, %32, %cst_15 {dimension_numbers = #tpu.dot_dimension_numbers<[0], [0], [1], [1], [0, 1, 1, 1], [], []>} : vector<8x128xbf16>, vector<8x128xbf16>, vector<128x128xf32> -> vector<128x128xf32>
    %cst_16 = arith.constant -1.000000e+30 : f32
    %34 = vector.shape_cast %12 : vector<1x128xi1> to vector<1x128xi1>
    %35 = vector.broadcast %34 : vector<1x128xi1> to vector<128x128xi1>
    %36 = vector.broadcast %cst_16 : f32 to vector<128x128xf32>
    %37 = arith.select %35, %33, %36 : vector<128x128xi1>, vector<128x128xf32>
    %cst_17 = arith.constant dense<0xFF800000> : vector<128xf32>
    %38 = vector.multi_reduction <maximumf>, %37, %cst_17 [1] : vector<128x128xf32> to vector<128xf32>
    %39 = vector.shape_cast %38 : vector<128xf32> to vector<128x1xf32>
    %40 = vector.broadcast %39 : vector<128x1xf32> to vector<128x128xf32>
    %41 = arith.subf %37, %40 : vector<128x128xf32>
    %42 = math.exp %41 : vector<128x128xf32>
    %cst_18 = arith.constant dense<0.000000e+00> : vector<128xf32>
    %43 = vector.multi_reduction <add>, %42, %cst_18 [1] : vector<128x128xf32> to vector<128xf32>
    %44 = vector.shape_cast %43 : vector<128xf32> to vector<128x1xf32>
    %45 = tpu.reciprocal %44 {approx = true} : vector<128x1xf32> -> vector<128x1xf32>
    %46 = vector.broadcast %45 : vector<128x1xf32> to vector<128x128xf32>
    %47 = arith.mulf %42, %46 : vector<128x128xf32>
    %cst_19 = arith.constant 0.000000e+00 : f32
    %48 = vector.shape_cast %15 : vector<128x1xi1> to vector<128x1xi1>
    %49 = vector.broadcast %48 : vector<128x1xi1> to vector<128x128xi1>
    %50 = vector.broadcast %cst_19 : f32 to vector<128x128xf32>
    %51 = arith.select %49, %47, %50 : vector<128x128xi1>, vector<128x128xf32>
    %cst_20 = arith.constant dense<0.000000e+00> : vector<128xf32>
    %52 = vector.multi_reduction <add>, %51, %cst_20 [0] : vector<128x128xf32> to vector<128xf32>
    %53 = vector.shape_cast %52 : vector<128xf32> to vector<1x128xf32>
    %cst_21 = arith.constant 9.99999971E-10 : f32
    %54 = vector.broadcast %cst_21 : f32 to vector<1x128xf32>
    %55 = arith.addf %54, %53 : vector<1x128xf32>
    %56 = tpu.reciprocal %55 {approx = true} : vector<1x128xf32> -> vector<1x128xf32>
    %57 = vector.broadcast %56 : vector<1x128xf32> to vector<128x128xf32>
    %58 = arith.mulf %51, %57 : vector<128x128xf32>
    %c0_22 = arith.constant 0 : index
    %c0_23 = arith.constant 0 : index
    %59 = vector.load %arg9[%c0_22, %c0_23] : memref<128x128xf32, #tpu.memory_space<vmem>>, vector<128x128xf32>
    tpu.vector_store %arg9[%c0_22, %c0_23], %58 {strides = array<i32>} : memref<128x128xf32, #tpu.memory_space<vmem>>, vector<128x128xf32>,
    %60 = arith.truncf %8 : vector<16x128xf32> to vector<16x128xbf16>
    %c0_24 = arith.constant 0 : index
    %c0_25 = arith.constant 0 : index
    %61 = vector.load %arg9[%c0_24, %c0_25] : memref<128x128xf32, #tpu.memory_space<vmem>>, vector<128x128xf32>
    %62 = arith.truncf %61 : vector<128x128xf32> to vector<128x128xbf16>
    %cst_26 = arith.constant dense<0.000000e+00> : vector<16x128xf32>
    %63 = tpu.matmul %60, %62, %cst_26 {dimension_numbers = #tpu.dot_dimension_numbers<[1], [0], [0], [1], [0, 0, 1, 1], [], []>} : vector<16x128xbf16>, vector<128x128xbf16>, vector<16x128xf32> -> vector<16x128xf32>
    %64 = vector.broadcast %31 : vector<16x1xf32> to vector<16x128xf32>
    %65 = arith.mulf %63, %64 : vector<16x128xf32>
    %66 = vector.broadcast %9 : vector<1x128xf32> to vector<16x128xf32>
    %67 = arith.addf %65, %66 : vector<16x128xf32>
    %cst_27 = arith.constant dense<0.000000e+00> : vector<16xf32>
    %68 = vector.multi_reduction <add>, %67, %cst_27 [1] : vector<16x128xf32> to vector<16xf32>
    %69 = vector.shape_cast %68 : vector<16xf32> to vector<16x1xf32>
    %cst_28 = arith.constant 1.562500e-02 : f32
    %70 = vector.broadcast %cst_28 : f32 to vector<16x1xf32>
    %71 = arith.mulf %69, %70 : vector<16x1xf32>
    %72 = vector.broadcast %71 : vector<16x1xf32> to vector<16x128xf32>
    %73 = arith.subf %0, %72 : vector<16x128xf32>
    %74 = arith.truncf %73 : vector<16x128xf32> to vector<16x128xbf16>
    %c0_29 = arith.constant 0 : index
    %c0_30 = arith.constant 0 : index
    %75 = vector.load %arg10[%c0_29, %c0_30] : memref<16x128xbf16, #tpu.memory_space<vmem>>, vector<16x128xbf16>
    tpu.vector_store %arg10[%c0_29, %c0_30], %74 {strides = array<i32>} : memref<16x128xbf16, #tpu.memory_space<vmem>>, vector<16x128xbf16>,
    %c0_31 = arith.constant 0 : index
    %c0_32 = arith.constant 0 : index
    %76 = vector.load %arg5[%c0_31, %c0_32] : memref<16x16xbf16, #tpu.memory_space<vmem>>, vector<16x16xbf16>
    %c0_33 = arith.constant 0 : index
    %c0_34 = arith.constant 0 : index
    %77 = vector.load %arg10[%c0_33, %c0_34] : memref<16x128xbf16, #tpu.memory_space<vmem>>, vector<16x128xbf16>
    %cst_35 = arith.constant dense<0.000000e+00> : vector<16x128xf32>
    %78 = tpu.matmul %76, %77, %cst_35 {dimension_numbers = #tpu.dot_dimension_numbers<[1], [0], [0], [1], [0, 0, 1, 1], [], []>} : vector<16x16xbf16>, vector<16x128xbf16>, vector<16x128xf32> -> vector<16x128xf32>
    %c0_36 = arith.constant 0 : index
    %c0_37 = arith.constant 0 : index
    %79 = vector.load %arg6[%c0_36, %c0_37] : memref<16x1xf32, #tpu.memory_space<vmem>>, vector<16x1xf32>
    %80 = vector.broadcast %79 : vector<16x1xf32> to vector<16x128xf32>
    %81 = arith.addf %78, %80 : vector<16x128xf32>
    %cst_38 = arith.constant 0.000000e+00 : f32
    %82 = vector.broadcast %cst_38 : f32 to vector<16x128xf32>
    %83 = arith.maximumf %81, %82 : vector<16x128xf32>
    %84 = arith.addf %0, %83 : vector<16x128xf32>
    %c0_39 = arith.constant 0 : index
    %c0_40 = arith.constant 0 : index
    %85 = vector.load %arg8[%c0_39, %c0_40] : memref<16x128xf32, #tpu.memory_space<vmem>>, vector<16x128xf32>
    tpu.vector_store %arg8[%c0_39, %c0_40], %84 {strides = array<i32>} : memref<16x128xf32, #tpu.memory_space<vmem>>, vector<16x128xf32>,
    return
  }
  func.func @transform_0(%arg0: i32) -> (i32, i32) {
    %c0_i32 = arith.constant 0 : i32
    %c0_i32_0 = arith.constant 0 : i32
    return %c0_i32, %arg0 : i32, i32
  }
  func.func @transform_1(%arg0: i32) -> (i32, i32) {
    %c0_i32 = arith.constant 0 : i32
    %c0_i32_0 = arith.constant 0 : i32
    %c0_i32_1 = arith.constant 0 : i32
    return %c0_i32, %c0_i32_0 : i32, i32
  }
  func.func @transform_2(%arg0: i32) -> (i32, i32) {
    %c0_i32 = arith.constant 0 : i32
    %c0_i32_0 = arith.constant 0 : i32
    %c0_i32_1 = arith.constant 0 : i32
    return %c0_i32, %c0_i32_0 : i32, i32
  }
  func.func @transform_3(%arg0: i32) -> (i32, i32) {
    %c0_i32 = arith.constant 0 : i32
    %c0_i32_0 = arith.constant 0 : i32
    %c0_i32_1 = arith.constant 0 : i32
    return %c0_i32, %c0_i32_0 : i32, i32
  }
  func.func @transform_4(%arg0: i32) -> (i32, i32) {
    %c0_i32 = arith.constant 0 : i32
    %c0_i32_0 = arith.constant 0 : i32
    %c0_i32_1 = arith.constant 0 : i32
    return %c0_i32, %c0_i32_0 : i32, i32
  }
  func.func @transform_5(%arg0: i32) -> (i32, i32) {
    %c0_i32 = arith.constant 0 : i32
    %c0_i32_0 = arith.constant 0 : i32
    %c0_i32_1 = arith.constant 0 : i32
    return %c0_i32, %c0_i32_0 : i32, i32
  }
  func.func @transform_6(%arg0: i32) -> (i32, i32) {
    %c0_i32 = arith.constant 0 : i32
    %c0_i32_0 = arith.constant 0 : i32
    %c0_i32_1 = arith.constant 0 : i32
    return %c0_i32, %c0_i32_0 : i32, i32
  }
  func.func @transform_7(%arg0: i32) -> (i32, i32) {
    %c0_i32 = arith.constant 0 : i32
    %c0_i32_0 = arith.constant 0 : i32
    return %c0_i32, %arg0 : i32, i32
  }
}

</mosaic_0001>

<bundles_post_ra>
// kernel: mul.9
= control target key start
LH: loop header
LB: loop body
LE: loop exit
PB: predicated region body
PF: predicated region fallthrough
CT: control target
= control target key end

     0   :  { %s34_s0 = inlined_call_operand.vmem [shape: f32[16,1], index: 0, kind: input, shape index: {}]   ;;  %s35_s1 = inlined_call_operand.vmem [shape: f32[16,1], index: 1, kind: input, shape index: {}]   ;;  %s36_s2 = inlined_call_operand.vmem [shape: f32[16,1], index: 2, kind: output, shape index: {}]  }
   0x1   :  { %v3_v0 = vld [vmem:[%s34_s0] sm:$0x1] }
   0x2   :  { %v4_v1 = vld [vmem:[%s35_s1] sm:$0x1] }
   0x3   :  { %v7_v2 = vmul.f32 %v4_v1, %v3_v0 }
   0x5   :  { %9 = vst [vmem:[%s36_s2] sm:$0x1] %v7_v2 }

// kernel: sa_layer_pallas.1
= control target key start
LH: loop header
LB: loop body
LE: loop exit
PB: predicated region body
PF: predicated region fallthrough
CT: control target
= control target key end

     0   :  { %s1428_s24 = smov 0   ;;  %s1430_s25 = smov 0   ;;  %s1583_s0 = inlined_call_operand.vmem [shape: f32[16,256], index: 0, kind: input, shape index: {}]   ;;  %s1584_s1 = inlined_call_operand.vmem [shape: bf16[8,16], index: 1, kind: input, shape index: {}]   ;;  %s1585_s2 = inlined_call_operand.vmem [shape: bf16[16,16], index: 2, kind: input, shape index: {}]   ;;  %s1586_s3 = inlined_call_operand.vmem [shape: f32[16,1], index: 3, kind: input, shape index: {}]   ;;  %s1587_s4 = inlined_call_operand.vmem [shape: bf16[16,16], index: 4, kind: input, shape index: {}]   ;;  %s1588_s5 = inlined_call_operand.vmem [shape: f32[16,1], index: 5, kind: input, shape index: {}]   ;;  %s1589_s6 = inlined_call_operand.vmem [shape: f32[1,128], index: 6, kind: input, shape index: {}]   ;;  %s1590_s7 = inlined_call_operand.vmem [shape: f32[16,256], index: 7, kind: output, shape index: {}]  }
   0x1   :  { %s1432_s26 = smov 0  }
   0x2 LB: > { %s1171_s27 = sadd.s32 4294967295, %s1383_s26   ;;  %s1445_s28 = sadd.s32 1, %s1383_s26   ;;  %s1383_s26 = sphi %s1432_s26, %s1594_s26   ;;  %s1379_s25 = sphi %s1430_s25, %s1593_s25   ;;  %s1375_s24 = sphi %s1428_s24, %s1592_s24  }
   0x3   : > { %s21_s29 = ssub.s32 %s1383_s26, %s1445_s28  ;;  %s24_s30 = sadd.s32 1, %s1379_s25 }
   0x4   : > { %p22_p0 = scmp.eq.s32.totalorder %s21_s29, 0  ;;  %p31_p1 = scmp.ne.s32.totalorder %s1379_s25, %s1375_s24 }
   0x5   : > { %p32_p2 = scmp.eq.s32.totalorder %s1383_s26, 0  ;;  %p187_p3 = scmp.eq.s32.totalorder %s1171_s27, 1 }
   0x6   : > { %s1456_s8 = scalar_select %p22_p0, %s1379_s25, %s24_s30  }
   0x7   : > { %p33_p4 = por %p32_p2, %p31_p1  ;;  %p1458_p5 = por %p187_p3, %p31_p1 }
   0x8   : > { %p1174_p6 = scmp.ge.s32.totalorder %s1383_s26, 2 }
   0xa   : > { %227 = sbr.rel (%p1174_p6) target bundleno = 20 (0x14), region = 40 }
   0xf   : > { %230 = sbr.rel (!%p33_p4) target bundleno = 20 (0x14), region = 44  ;;  %s232_s10 = sand.u32 (%p33_p4), 1, %s1379_s25  }
  0x10   : > { %s1176_s11 = sshll.u32 (%p33_p4), %s1383_s26, 3  ;;  %s1175_s12 = sshll.u32 (%p33_p4), %s232_s10, 4 }
  0x11   : > { %s236_s15 = scalar_lea.vmem (%p33_p4), %s1583_s0, %s1176_s11  ;;  %s234_s16 = scalar_lea.vmem (%p33_p4), [#allocation4], %s1175_s12 }
  0x12   : > { %v267_v0 = vld [vmem:[%s236_s15] sm:$0xff] (%p33_p4)  ;;  %v269_v1 = vld [vmem:[%s236_s15 + $0x10] sm:$0xff] (%p33_p4) }
  0x13   : > { %268 = vst [vmem:[%s234_s16] sm:$0xff] (%p33_p4), %v267_v0  ;;  %270 = vst [vmem:[%s234_s16 + $0x8] sm:$0xff] (%p33_p4), %v269_v1 }
  0x14 PF: > { %p1177_p7 = scmp.ge.s32.totalorder %s1383_s26, 1  ;;  %p275_p8 = scmp.lt.s32.totalorder %s1383_s26, 3 }
  0x16   : > { %p276_p9 = pnand %p1177_p7, %p275_p8 }
  0x17   : > { %s282_s17 = sand.u32 (!%p276_p9), 1, %s1375_s24  }
  0x18   : > { %279 = sbr.rel (%p276_p9) target bundleno = 1494 (0x5d6), region = 82  ;;  %s1472_s18 = sshll.u32 (!%p276_p9), %s282_s17, 4 }
  0x19   : > { %s284_s19 = scalar_lea.vmem (!%p276_p9), [#allocation4], %s1472_s18  ;;  %s311_s20 = scalar_lea.vmem (!%p276_p9), [#allocation5], %s1472_s18 }
  0x1d   : > { %v1385_v2 = vmov 0.0   ;;  %vm1386_vm0 = vmmov 0   ;;  %v1480_v3 = vld [vmem:[%s284_s19] sm:$0xff]  ;;  %v1482_v4 = vld [vmem:[%s284_s19 + $0x8] sm:$0xff]  ;;  %vm317_vm1 = vcmask 130048   ;;  %vm534_vm2 = vcmask 1043456  }
  0x1e   : > { %1232 = vmatprep.subr.bf16.mxu0 %v1385_v2  ;;  %1234 = vmatprep.mubr.msk.bf16.mxu0 %vm1386_vm0, %v1385_v2  ;;  %v315_v5 = vpack.c.bf16 %v1482_v4, %v1480_v3  ;;  %v316_v6 = vld [vmem:[%s1584_s1] sm:$0xf]  ;;  %vm509_vm3 = vcmask 64512   ;;  %v425_v22 = vlaneseq  ;;  %v1387_v40 = vmov 0   ;;  %s1198_s21 = sshll.u32 (%p1458_p5), %s1171_s27, 3 }
  0x1f   : > { %1238 = vmatprep.subr.bf16.mxu1 %v1385_v2  ;;  %1240 = vmatprep.mubr.msk.bf16.mxu1 %vm1386_vm0, %v1385_v2  ;;  %v1318_v18 = vld [vmem:[%s1585_s2] sm:$0xff]   ;;  %s1077_s24 = scalar_lea.vmem (%p1458_p5), %s1590_s7, %s1198_s21 }
  0x20   : > { %1233 = vmatpush3.bf16.msra.mxu0 %v315_v5  ;;  %1239 = vmatpush3.bf16.msra.mxu1 %v315_v5  ;;  %v1508_v23 = vand.u32 127, %v425_v22 }
  0x21   : > { %1262 = vmatprep.subr.bf16.mxu1 %v1385_v2  ;;  %1316 = vset.pattern.permute.xlu1 %v1387_v40 }
  0x22   : > { %vm427_vm4 = vcmp.lt.s32.totalorder %v1508_v23, 64  ;;  %v997_v23 = vld [vmem:[%s1588_s5 + $0x8] sm:$0xff] }
  0x23   : > { %1235 = vmatmul.mubr.msk.bf16.vlgmr.msra.gmra.mxu0 %vm317_vm1, %v316_v6  ;;  %1241 = vmatmul.mubr.msk.bf16.vlgmr.msra.gmra.mxu1 %vm317_vm1, %v1318_v18 }
  0x24   : > { %1278 = vmatprep.mubr.msk.bf16.mxu1 %vm1386_vm0, %v1385_v2 }
  0xe3   : > { %v355_v7 = vpop.f32.mrf.mxu0 }
  0xe4   : > { %v492_v8 = vpack.c.bf16 %v355_v7, %v355_v7 }
  0xe5   : > { %v1236_v9 = vpop.f32.mrf.mxu0 }
  0xe6   : > { %493 = vxpose.xlu0.c.b16.start.end [1/1] (short) %v492_v8, 128  ;;  %1288 = vmatprep.subr.msk.bf16.mxu0 %vm534_vm2, %v492_v8  ;;  %v536_v10 = vsel %vm534_vm2, %v492_v8, 0 }
  0xe7   : > { %v358_v11 = vpop.f32.mrf.mxu0  ;;  %1245 = vmatpush3.bf16.msra.mxu0 %v536_v10 }
  0xe8   : > { %1282 = vmatprep.subr.bf16.mxu0 %v1385_v2 }
  0xe9   : > { %v1237_v12 = vpop.f32.mrf.mxu0 }
  0xef   : > { %1317 = vset.pattern.permute.xlu0 %v1387_v40 }
 0x148   : > { %v501_v13 = vpop.trf.xlu0 }
 0x149   : > { %1246 = vmatprep.mubr.msk.bf16.mxu0 %vm509_vm3, %v501_v13 }
 0x14c   : > { %v502_v14 = vpop.trf.xlu0 }
 0x14d   : > { %1247 = vmatmul.mubr.msk.bf16.vlgmr.msra.gmra.mxu0 %vm509_vm3, %v502_v14 }
 0x150   : > { %v503_v15 = vpop.trf.xlu0 }
 0x151   : > { %1250 = vmatprep.mubr.msk.bf16.mxu0 %vm509_vm3, %v503_v15 }
 0x154   : > { %v504_v16 = vpop.trf.xlu0 }
 0x155   : > { %1251 = vmatmul.mubr.msk.bf16.gmra.mxu0 %vm509_vm3, %v504_v16 }
 0x158   : > { %v505_v17 = vpop.trf.xlu0 }
 0x159   : > { %1254 = vmatprep.mubr.msk.bf16.mxu0 %vm509_vm3, %v505_v17 }
 0x15c   : > { %v506_v19 = vpop.trf.xlu0 }
 0x15d   : > { %1255 = vmatmul.mubr.msk.bf16.gmra.mxu0 %vm509_vm3, %v506_v19 }
 0x160   : > { %v507_v20 = vpop.trf.xlu0 }
 0x161   : > { %1258 = vmatprep.mubr.msk.bf16.mxu0 %vm509_vm3, %v507_v20  ;;  %v363_v20 = vld [vmem:[%s1586_s3] sm:$0xff] }
 0x164   : > { %v508_v21 = vpop.trf.xlu0 }
 0x165   : > { %1259 = vmatmul.mubr.msk.bf16.gmra.mxu0 %vm509_vm3, %v508_v21  ;;  %v417_v21 = vpop.f32.mrf.mxu1 }
 0x166   : > { %1284 = vmatprep.mubr.msk.bf16.mxu0 %vm1386_vm0, %v1385_v2 }
 0x167   : > { %v1242_v22 = vpop.f32.mrf.mxu1 }
 0x20d   : > { %v1248_v24 = vpop.f32.mrf.mxu0 }
 0x20e   : > { %v637_v25 = vsel %vm427_vm4, %v1248_v24, -1e+30  ;;  %v420_v24 = vpop.f32.mrf.mxu1 }
 0x20f   : > { %655 = vmax.xlane.f32.xlu1 %v637_v25  ;;  %v572_v26 = vpop.f32.mrf.mxu0 }
 0x210   : > { %v635_v27 = vsel %vm427_vm4, %v572_v26, -1e+30  ;;  %v1243_v26 = vpop.f32.mrf.mxu1 }
 0x211   : > { %651 = vmax.xlane.f32.xlu0 %v635_v27  ;;  %v1249_v28 = vpop.f32.mrf.mxu0 }
 0x212   : > { %v638_v29 = vsel %vm427_vm4, %v1249_v28, -1e+30 }
 0x213   : > { %657 = vmax.xlane.f32.xlu1 %v638_v29  ;;  %v575_v30 = vpop.f32.mrf.mxu0 }
 0x214   : > { %v636_v32 = vsel %vm427_vm4, %v575_v30, -1e+30 }
 0x215   : > { %v1252_v31 = vpop.f32.mrf.mxu0 }
 0x216   : > { %v641_v34 = vsel %vm427_vm4, %v1252_v31, -1e+30 }
 0x217   : > { %653 = vmax.xlane.f32.xlu1 %v636_v32  ;;  %v588_v33 = vpop.f32.mrf.mxu0 }
 0x218   : > { %v639_v36 = vsel %vm427_vm4, %v588_v33, -1e+30 }
 0x219   : > { %v1253_v35 = vpop.f32.mrf.mxu0 }
 0x21a   : > { %v642_v39 = vsel %vm427_vm4, %v1253_v35, -1e+30 }
 0x21b   : > { %663 = vmax.xlane.f32.xlu1 %v641_v34  ;;  %v591_v37 = vpop.f32.mrf.mxu0 }
 0x21c   : > { %v640_v38 = vsel %vm427_vm4, %v591_v37, -1e+30 }
 0x21d   : > { %v1256_v41 = vpop.f32.mrf.mxu0 }
 0x21f   : > { %659 = vmax.xlane.f32.xlu1 %v639_v36  ;;  %v604_v42 = vpop.f32.mrf.mxu0 }
 0x221   : > { %v1257_v43 = vpop.f32.mrf.mxu0 }
 0x223   : > { %661 = vmax.xlane.f32.xlu1 %v640_v38  ;;  %v607_v44 = vpop.f32.mrf.mxu0 }
 0x225   : > { %v1260_v45 = vpop.f32.mrf.mxu0 }
 0x227   : > { %665 = vmax.xlane.f32.xlu1 %v642_v39  ;;  %v620_v46 = vpop.f32.mrf.mxu0 }
 0x229   : > { %v1261_v47 = vpop.f32.mrf.mxu0 }
 0x22b   : > { %v623_v48 = vpop.f32.mrf.mxu0 }
 0x298   : > { %v656_v49 = vpop.xlane.xlu1 %655 }
 0x299   : > { %v685_v50 = vsub.f32 %v637_v25, %v656_v49  ;;  %v364_v25 = vld [vmem:[%s1586_s3 + $0x8] sm:$0xff] }
 0x29a   : > { %v652_v51 = vpop.xlane.xlu0 %651 }
 0x29b   : > { %v703_v52 = vmul.f32 1.442695, %v685_v50  ;;  %v683_v53 = vsub.f32 %v635_v27, %v652_v51 }
 0x29c   : > { %v658_v54 = vpop.xlane.xlu1 %657 }
 0x29d   : > { %1321 = vpow2.f32 %v703_v52  ;;  %v699_v55 = vmul.f32 1.442695, %v683_v53  ;;  %v686_v57 = vsub.f32 %v638_v29, %v658_v54 }
 0x29f   : > { %1323 = vpow2.f32 %v699_v55  ;;  %v705_v61 = vmul.f32 1.442695, %v686_v57 }
 0x2a0   : > { %v654_v56 = vpop.xlane.xlu1 %653 }
 0x2a1   : > { %v684_v58 = vsub.f32 %v636_v32, %v654_v56 }
 0x2a3   : > { %v701_v59 = vmul.f32 1.442695, %v684_v58 }
 0x2a4   : > { %v664_v60 = vpop.xlane.xlu1 %663 }
 0x2a5   : > { %1325 = vpow2.f32 %v701_v59  ;;  %v689_v62 = vsub.f32 %v641_v34, %v664_v60 }
 0x2a6   : > { %1327 = vpow2.f32 %v705_v61 }
 0x2a7   : > { %v711_v6 = vmul.f32 1.442695, %v689_v62 }
 0x2a8   : > { %v660_v63 = vpop.xlane.xlu1 %659 }
 0x2a9   : > { %v687_v0 = vsub.f32 %v639_v36, %v660_v63 }
 0x2aa   : > { %v1322_v1 = vpop.eup %1321 }
 0x2ab   : > { %v707_v5 = vmul.f32 1.442695, %v687_v0  ;;  %735 = vadd.xlane.f32.xlu1 %v1322_v1 }
 0x2ac   : > { %v662_v7 = vpop.xlane.xlu1 %661  ;;  %v1324_v9 = vpop.eup %1323 }
 0x2ad   : > { %1329 = vpow2.f32 %v707_v5  ;;  %v688_v8 = vsub.f32 %v640_v38, %v662_v7 }
 0x2ae   : > { %1331 = vpow2.f32 %v711_v6 }
 0x2af   : > { %v709_v10 = vmul.f32 1.442695, %v688_v8  ;;  %731 = vadd.xlane.f32.xlu1 %v1324_v9 }
 0x2b0   : > { %v666_v11 = vpop.xlane.xlu1 %665 }
 0x2b1   : > { %1333 = vpow2.f32 %v709_v10  ;;  %v690_v12 = vsub.f32 %v642_v39, %v666_v11 }
 0x2b2   : > { %v1326_v13 = vpop.eup %1325 }
 0x2b3   : > { %v713_v14 = vmul.f32 1.442695, %v690_v12  ;;  %733 = vadd.xlane.f32.xlu1 %v1326_v13  ;;  %v1328_v15 = vpop.eup %1327 }
 0x2b5   : > { %1335 = vpow2.f32 %v713_v14 }
 0x2b7   : > { %737 = vadd.xlane.f32.xlu1 %v1328_v15 }
 0x2ba   : > { %v1330_v16 = vpop.eup %1329 }
 0x2bb   : > { %739 = vadd.xlane.f32.xlu1 %v1330_v16  ;;  %v1332_v17 = vpop.eup %1331 }
 0x2be   : > { %v1334_v18 = vpop.eup %1333 }
 0x2bf   : > { %743 = vadd.xlane.f32.xlu1 %v1332_v17  ;;  %741 = vadd.xlane.f32.xlu0 %v1334_v18 }
 0x2c2   : > { %v1336_v19 = vpop.eup %1335 }
 0x2c3   : > { %745 = vadd.xlane.f32.xlu0 %v1336_v19 }
 0x2d0   : > { %367 = vperm.xlu1 %1316, %v363_v20  }
 0x2d9   : > { %372 = vperm.xlu0 %1317, %v364_v25  }
 0x334   : > { %v736_v27 = vpop.xlane.xlu1 %735 }
 0x338   : > { %v732_v28 = vpop.xlane.xlu1 %731 }
 0x339   : > { %1337 = vrcp.f32 %v732_v28 }
 0x33c   : > { %v734_v29 = vpop.xlane.xlu1 %733 }
 0x33d   : > { %1339 = vrcp.f32 %v734_v29 }
 0x33e   : > { %1341 = vrcp.f32 %v736_v27 }
 0x340   : > { %v738_v30 = vpop.xlane.xlu1 %737 }
 0x341   : > { %1343 = vrcp.f32 %v738_v30 }
 0x344   : > { %v740_v31 = vpop.xlane.xlu1 %739 }
 0x345   : > { %1345 = vrcp.f32 %v740_v31 }
 0x346   : > { %v1338_v32 = vpop.eup %1337 }
 0x347   : > { %v779_v36 = vmul.f32 %v1338_v32, %v1324_v9 }
 0x348   : > { %v742_v33 = vpop.xlane.xlu0 %741  ;;  %v744_v34 = vpop.xlane.xlu1 %743 }
 0x349   : > { %1347 = vrcp.f32 %v742_v33 }
 0x34a   : > { %v1340_v35 = vpop.eup %1339  ;;  %1349 = vrcp.f32 %v744_v34 }
 0x34b   : > { %v780_v37 = vmul.f32 %v1340_v35, %v1326_v13  ;;  %v1342_v38 = vpop.eup %1341 }
 0x34c   : > { %v746_v39 = vpop.xlane.xlu0 %745  ;;  %v368_v40 = vpop.permute.xlu1 %367  ;;  %v781_v44 = vmul.f32 %v1342_v38, %v1322_v1 }
 0x34d   : > { %v843_v41 = vadd.f32 %v780_v37, %v779_v36  ;;  %1351 = vrcp.f32 %v746_v39  ;;  %v1533_v42 = vadd.f32 %v417_v21, %v368_v40 }
 0x34e   : > { %v1344_v43 = vpop.eup %1343 }
 0x34f   : > { %v463_v45 = vsel %vm427_vm4, %v1533_v42, -1e+30  ;;  %v844_v46 = vadd.f32 %v843_v41, %v781_v44  ;;  %v782_v47 = vmul.f32 %v1344_v43, %v1328_v15 }
 0x350   : > { %465 = vmax.xlane.f32.xlu1 %v463_v45 }
 0x351   : > { %v845_v51 = vadd.f32 %v844_v46, %v782_v47 }
 0x352   : > { %v1346_v48 = vpop.eup %1345 }
 0x353   : > { %v783_v49 = vmul.f32 %v1346_v48, %v1330_v16 }
 0x354   : > { %v373_v50 = vpop.permute.xlu0 %372 }
 0x355   : > { %v421_v52 = vadd.f32 %v420_v24, %v373_v50  ;;  %v846_v55 = vadd.f32 %v845_v51, %v783_v49  ;;  %v1191_v51 = vld [vmem:[%s1589_s6] ss:$0 sm:$0xff] }
 0x356   : > { %v1348_v53 = vpop.eup %1347 }
 0x357   : > { %v1350_v54 = vpop.eup %1349  ;;  %v784_v56 = vmul.f32 %v1348_v53, %v1334_v18  ;;  %v464_v57 = vsel %vm427_vm4, %v421_v52, -1e+30  ;;  %v898_v58 = vpack.c.bf16 %v421_v52, %v1533_v42 }
 0x358   : > { %467 = vmax.xlane.f32.xlu0 %v464_v57  ;;  %v785_v60 = vmul.f32 %v1350_v54, %v1332_v17 }
 0x359   : > { %v847_v59 = vadd.f32 %v846_v55, %v784_v56 }
 0x35a   : > { %v1352_v61 = vpop.eup %1351 }
 0x35b   : > { %v848_v62 = vadd.f32 %v847_v59, %v785_v60  ;;  %v786_v63 = vmul.f32 %v1352_v61, %v1336_v19 }
 0x35d   : > { %v849_v0 = vadd.f32 %v848_v62, %v786_v63 }
 0x35f   : > { %v858_v1 = vrot.slane %v849_v0, 4 }
 0x361   : > { %v859_v5 = vadd.f32 %v858_v1, %v849_v0 }
 0x363   : > { %v860_v6 = vrot.slane %v859_v5, 2 }
 0x365   : > { %v861_v7 = vadd.f32 %v860_v6, %v859_v5 }
 0x367   : > { %v862_v8 = vrot.slane %v861_v7, 1 }
 0x369   : > { %v863_v9 = vadd.f32 %v862_v8, %v861_v7  ;;  %v1320_v8 = vld [vmem:[%s1587_s4] sm:$0xff]  }
 0x36b   : > { %v864_v10 = vadd.f32 1e-09, %v863_v9 }
 0x36d   : > { %1353 = vrcp.f32 %v864_v10 }
 0x36e   : > { %1005 = vperm.xlu0 %1317, %v997_v23  }
 0x37a   : > { %v1354_v11 = vpop.eup %1353 }
 0x37b   : > { %v874_v12 = vmul.f32 0.0, %v1354_v11  ;;  %v866_v13 = vmul.f32 %v1354_v11, %v779_v36  ;;  %v867_v15 = vmul.f32 %v1354_v11, %v780_v37  ;;  %v872_v17 = vmul.f32 %v1354_v11, %v785_v60  ;;  %v996_v60 = vld [vmem:[%s1588_s5] sm:$0xff] }
 0x37c   : > { %v873_v18 = vmul.f32 %v1354_v11, %v786_v63  ;;  %v870_v20 = vmul.f32 %v1354_v11, %v783_v49  ;;  %v871_v21 = vmul.f32 %v1354_v11, %v784_v56  ;;  %v868_v24 = vmul.f32 %v1354_v11, %v781_v44 }
 0x37d   : > { %v919_v14 = vpack.c.bf16 %v874_v12, %v874_v12  ;;  %v915_v16 = vpack.c.bf16 %v867_v15, %v866_v13  ;;  %v869_v25 = vmul.f32 %v1354_v11, %v782_v47 }
 0x37e   : > { %v918_v19 = vpack.c.bf16 %v873_v18, %v872_v17  ;;  %v917_v22 = vpack.c.bf16 %v871_v21, %v870_v20 }
 0x37f   : > { %1263 = vmatpush3.bf16.msra.mxu1 %v919_v14  ;;  %v916_v26 = vpack.c.bf16 %v869_v25, %v868_v24 }
 0x380   : > { %1264 = vmatprep.subr.bf16.mxu1 %v1385_v2 }
 0x383   : > { %1265 = vmatpush3.bf16.msra.mxu1 %v919_v14 }
 0x384   : > { %1266 = vmatprep.subr.bf16.mxu1 %v1385_v2 }
 0x387   : > { %1267 = vmatpush3.bf16.msra.mxu1 %v919_v14 }
 0x388   : > { %1268 = vmatprep.subr.bf16.mxu1 %v1385_v2 }
 0x38b   : > { %1269 = vmatpush3.bf16.msra.mxu1 %v919_v14 }
 0x38c   : > { %1270 = vmatprep.subr.bf16.mxu1 %v1385_v2 }
 0x38f   : > { %1271 = vmatpush3.bf16.msra.mxu1 %v918_v19 }
 0x390   : > { %1272 = vmatprep.subr.bf16.mxu1 %v1385_v2 }
 0x393   : > { %1273 = vmatpush3.bf16.msra.mxu1 %v917_v22 }
 0x394   : > { %1274 = vmatprep.subr.bf16.mxu1 %v1385_v2 }
 0x397   : > { %1275 = vmatpush3.bf16.msra.mxu1 %v916_v26 }
 0x398   : > { %1276 = vmatprep.subr.bf16.mxu1 %v1385_v2 }
 0x39b   : > { %1277 = vmatpush3.bf16.msra.mxu1 %v915_v16 }
 0x39e   : > { %1279 = vmatmul.mubr.bf16.vlgmr.msra.gmra.mxu1 %v898_v58 }
 0x3d9   : > { %v466_v27 = vpop.xlane.xlu1 %465 }
 0x3e1   : > { %v468_v28 = vpop.xlane.xlu0 %467 }
 0x3e2   : > { %v469_v29 = vmax.f32 %v466_v27, %v468_v28 }
 0x3e4   : > { %v470_v30 = vrot.slane %v469_v29, 4 }
 0x3e6   : > { %v471_v31 = vmax.f32 %v469_v29, %v470_v30 }
 0x3e8   : > { %v472_v32 = vrot.slane %v471_v31, 2 }
 0x3e9   : > { %v1006_v13 = vpop.permute.xlu0 %1005 }
 0x3ea   : > { %v473_v33 = vmax.f32 %v471_v31, %v472_v32 }
 0x3ec   : > { %v474_v34 = vrot.slane %v473_v33, 1 }
 0x3ee   : > { %v475_v35 = vmax.f32 %v473_v33, %v474_v34 }
 0x3f0   : > { %v476_v36 = vsub.f32 %v466_v27, %v475_v35  ;;  %v477_v37 = vsub.f32 %v468_v28, %v475_v35 }
 0x3f2   : > { %v478_v38 = vmul.f32 1.442695, %v476_v36  ;;  %v480_v39 = vmul.f32 1.442695, %v477_v37 }
 0x3f4   : > { %1355 = vpow2.f32 %v478_v38 }
 0x3f5   : > { %1357 = vpow2.f32 %v480_v39 }
 0x401   : > { %v1356_v40 = vpop.eup %1355 }
 0x402   : > { %v1358_v41 = vpop.eup %1357 }
 0x403   : > { %v482_v2 = vadd.f32 %v1358_v41, %v1356_v40 }
 0x405   : > { %v483_v42 = vrot.slane %v482_v2, 4 }
 0x407   : > { %v484_v43 = vadd.f32 %v483_v42, %v482_v2 }
 0x409   : > { %v485_v44 = vrot.slane %v484_v43, 2 }
 0x40b   : > { %v486_v45 = vadd.f32 %v485_v44, %v484_v43 }
 0x40d   : > { %v487_v46 = vrot.slane %v486_v45, 1 }
 0x40f   : > { %v488_v47 = vadd.f32 %v487_v46, %v486_v45 }
 0x411   : > { %1359 = vrcp.f32 %v488_v47 }
 0x41e   : > { %v1360_v48 = vpop.eup %1359 }
 0x41f   : > { %v490_v49 = vmul.f32 %v1360_v48, %v1356_v40  ;;  %v491_v54 = vmul.f32 %v1360_v48, %v1358_v41 }
 0x45e   : > { %v957_v50 = vpop.f32.mrf.mxu1 }
 0x45f   : > { %v964_v52 = vmul.f32 %v957_v50, %v490_v49 }
 0x460   : > { %v1280_v53 = vpop.f32.mrf.mxu1 }
 0x461   : > { %v972_v55 = vadd.f32 %v1191_v51, %v964_v52 }
 0x462   : > { %v960_v56 = vpop.f32.mrf.mxu1 }
 0x463   : > { %v965_v57 = vmul.f32 %v960_v56, %v491_v54  ;;  %974 = vadd.xlane.f32.xlu1 %v972_v55 }
 0x464   : > { %v1281_v58 = vpop.f32.mrf.mxu1 }
 0x465   : > { %v973_v59 = vadd.f32 %v1191_v51, %v965_v57 }
 0x467   : > { %976 = vadd.xlane.f32.xlu1 %v973_v59 }
 0x478   : > { %1000 = vperm.xlu1 %1316, %v996_v60  }
 0x4ec   : > { %v975_v61 = vpop.xlane.xlu1 %974 }
 0x4ed   : > { %v978_v62 = vmul.f32 0.015625, %v975_v61 }
 0x4ef   : > { %v980_v1 = vsub.f32 %v1480_v3, %v978_v62 }
 0x4f0   : > { %v977_v63 = vpop.xlane.xlu1 %976 }
 0x4f1   : > { %v979_v0 = vmul.f32 0.015625, %v977_v63 }
 0x4f3   : > { %v981_v5 = vsub.f32 %v1482_v4, %v979_v0 }
 0x4f4   : > { %v1001_v9 = vpop.permute.xlu1 %1000 }
 0x4f5   : > { %v1206_v6 = vpack.c.bf16 %v981_v5, %v980_v1 }
 0x4f7   : > { %1207 = vst [vmem:[#allocation3] sm:$0xff] %v1206_v6  }
 0x4fe   : > { %v1319_v7 = vld [vmem:[#allocation3] sm:$0xff]  }
 0x4ff   : > { %1283 = vmatpush3.bf16.msra.mxu0 %v1319_v7 }
 0x502   : > { %1285 = vmatmul.mubr.msk.bf16.vlgmr.msra.gmra.mxu0 %vm317_vm1, %v1320_v8 }
 0x5c2   : > { %v1056_v10 = vpop.f32.mrf.mxu0 }
 0x5c3   : > { %v1057_v23 = vadd.f32 %v1056_v10, %v1001_v9 }
 0x5c4   : > { %v1286_v11 = vpop.f32.mrf.mxu0 }
 0x5c5   : > { %v1063_v12 = vmax.f32 %v1057_v23, 0.0 }
 0x5c6   : > { %v1059_v14 = vpop.f32.mrf.mxu0 }
 0x5c7   : > { %v1065_v15 = vadd.f32 %v1063_v12, %v1480_v3  ;;  %v1060_v16 = vadd.f32 %v1059_v14, %v1006_v13 }
 0x5c8   : > { %v1287_v17 = vpop.f32.mrf.mxu0 }
 0x5c9   : > { %1067 = vst [vmem:[%s311_s20] sm:$0xff] %v1065_v15  ;;  %v1064_v18 = vmax.f32 %v1060_v16, 0.0  ;;  %1075 = sbr.rel (!%p1458_p5) target bundleno = 1494 (0x5d6), region = 90 }
 0x5cb   : > { %v1066_v19 = vadd.f32 %v1064_v18, %v1482_v4 }
 0x5cd   : > { %1068 = vst [vmem:[%s311_s20 + $0x8] sm:$0xff] %v1066_v19 }
 0x5d0   : > { %v1108_v20 = vld [vmem:[%s311_s20] sm:$0xff] }
 0x5d1   : > { %1109 = vst [vmem:[%s1077_s24] sm:$0xff] %v1108_v20 }
 0x5d4   : > { %v1110_v21 = vld [vmem:[%s311_s20 + $0x8] sm:$0xff] }
 0x5d5   : > { %1111 = vst [vmem:[%s1077_s24 + $0x10] sm:$0xff] %v1110_v21 }
 0x5d6 PF: > { %p14_p10 = scmp.ge.s32.totalorder %s1445_s28, 4   ;;  %s1592_s24 = smov %s1379_s25 }
 0x5d7   : > { %s1593_s25 = smov %s1456_s8  ;;  %s1594_s26 = smov %s1445_s28 }
 0x5d8   :  { %16 = sbr.rel (!%p14_p10) target bundleno = 2 (0x2), region = 159 }

</bundles_post_ra>
